<compile_context>
chip_gen: v7x
topology: tpu7x:2x2x1
jax: 0.10.0
libtpu: 0.0.40
codegen_flags: <defaults>
</compile_context>

<pallas_src>
import functools

import jax
import jax.numpy as jnp
import numpy as np
from jax.experimental import pallas as pl
from jax.experimental.pallas import tpu as pltpu


# ---------------------------------------------------------------------------
# helpers
# ---------------------------------------------------------------------------
def _round_up(v, m):
    return ((v + m - 1) // m) * m


def _choose_tile(padded, base, cap):
    """Largest multiple of `base` that divides `padded` and is <= cap."""
    cap = max(base, (cap // base) * base)
    best = base
    t = base
    limit = min(padded, cap)
    while t <= limit:
        if padded % t == 0:
            best = t
        t += base
    return best


@functools.lru_cache(maxsize=1)
def _hw_caps():
    """(vmem_bytes, tm_cap, tk_cap, tj_cap, tj_diag_cap) derived per-generation."""
    vmem = 64 * 1024 * 1024
    try:
        info = pltpu.get_tpu_info()
        v = getattr(info, "vmem_capacity_bytes", None)
        if v:
            vmem = int(v)
    except Exception:
        pass
    if vmem >= 100 * 1024 * 1024:          # v5e / v6e: 128 MiB VMEM
        return vmem, 512, 1024, 1024, 2048
    return vmem, 256, 1024, 1024, 1024     # v7x: 64 MiB per-core VMEM


def _vmem_limit(TM, TK, TJ, vmem_cap):
    # 2 LHS + 2 RHS + 2 output tiles, double-buffered, + 2 f32 accumulators.
    stage = 4 * (2 * TM * TK + 2 * TK * TJ + 2 * TM * TJ)
    need = 2 * stage + 2 * 4 * TM * TJ + (4 << 20)
    return int(min(max(need, 32 << 20), int(vmem_cap * 0.9)))


# ---------------------------------------------------------------------------
# Kernel 1: element-wise leaky-ReLU relaxation over (batch, n)
# ---------------------------------------------------------------------------
def _leaky_relaxation_kernel(l_ref, u_ref, alpha_ref,
                             ld_out, ud_out, lb_out, ub_out, *, negative_slope):
    l = l_ref[...]
    u = u_ref[...]
    a = alpha_ref[...]
    ns = negative_slope

    is_neg = u <= 0.0
    is_pos = l >= 0.0
    crossing = jnp.logical_not(jnp.logical_or(is_neg, is_pos))

    base = jnp.where(is_neg, ns, 1.0)           # eye scaling for non-crossing rows
    denom = jnp.where(crossing, u - l, 1.0)     # safe divide (u > l when crossing)
    slope = (u - ns * l) / denom
    slope_bias = l * (ns - slope)
    alpha_coef = a * (1.0 - ns) + ns

    if ns <= 1.0:
        ud = jnp.where(crossing, slope, base)
        ub = jnp.where(crossing, slope_bias, 0.0)
        ld = jnp.where(crossing, alpha_coef, base)
        lb = jnp.zeros_like(l)
    else:
        ld = jnp.where(crossing, slope, base)
        lb = jnp.where(crossing, slope_bias, 0.0)
        ud = jnp.where(crossing, alpha_coef, base)
        ub = jnp.zeros_like(l)

    ld_out[...] = ld
    ud_out[...] = ud
    lb_out[...] = lb
    ub_out[...] = ub


def leaky_relaxation(l_bound, u_bound, alpha, negative_slope, *, tn_cap=2048):
    batch, n = l_bound.shape
    Bp = _round_up(batch, 8)
    N_pad = _round_up(n, 128)
    TN = _choose_tile(N_pad, 128, tn_cap)

    def pad2(x):
        return jnp.pad(jnp.asarray(x, jnp.float32), ((0, Bp - batch), (0, N_pad - n)))

    spec = pl.BlockSpec((Bp, TN), lambda i: (0, i))
    kernel = functools.partial(_leaky_relaxation_kernel,
                               negative_slope=float(negative_slope))
    ld, ud, lb, ub = pl.pallas_call(
        kernel,
        grid=(N_pad // TN,),
        in_specs=[spec, spec, spec],
        out_specs=(spec, spec, spec, spec),
        out_shape=tuple(jax.ShapeDtypeStruct((Bp, N_pad), jnp.float32) for _ in range(4)),
        compiler_params=pltpu.CompilerParams(dimension_semantics=("parallel",)),
    )(pad2(l_bound), pad2(u_bound), pad2(alpha))
    return ld[:batch, :n], ud[:batch, :n], lb[:batch, :n], ub[:batch, :n]


# ---------------------------------------------------------------------------
# Kernel 2: back-substitution of a DIAGONAL polygon through its parent.
#   Pure VPU row-scale (no MXU matmul); relaxation bias is added into the
#   homogeneous bias column via a lane mask.
# ---------------------------------------------------------------------------
def _diag_backsub_kernel(ld_ref, ud_ref, lb_ref, ub_ref, pu_ref, pd_ref,
                         lo_ref, uo_ref, *, bias_col, tj, j_axis):
    ld = ld_ref[...]            # (TM, 1)
    ud = ud_ref[...]
    pu = pu_ref[...]            # (TM, TJ) rows of the parent's augmented Pu
    pd = pd_ref[...]            # (TM, TJ) rows of (Pl_aug - Pu_aug)

    lo = ld * pu + jnp.maximum(ld, 0.0) * pd
    uo = ud * pu + jnp.minimum(ud, 0.0) * pd

    col = (jax.lax.broadcasted_iota(jnp.int32, pu.shape, 1)
           + pl.program_id(j_axis) * tj)
    on_bias = col == bias_col
    lo_ref[...] = lo + jnp.where(on_bias, lb_ref[...], 0.0)
    uo_ref[...] = uo + jnp.where(on_bias, ub_ref[...], 0.0)


def _diag_aug_step(ld, ud, lb, ub, parent):
    """First back-substitution of a diagonal polygon through `parent`.
    Returns augmented (B, M_pad, J_pad) lower/upper coefficient slabs."""
    pu_aug, pd_aug, rhs_batched = parent._aug_rhs()
    J_pad = pu_aug.shape[-1]
    B, m = ld.shape
    if rhs_batched and pu_aug.shape[0] != B:
        raise ValueError("batch mismatch between diag polygon and its parent")
    M_pad = _round_up(m, 8)
    bias_col = parent.k
    _, tm_cap, _, _, tj_diag_cap = _hw_caps()
    TM = _choose_tile(M_pad, 8, tm_cap)
    TJ = _choose_tile(J_pad, 128, tj_diag_cap)

    def to3(v):
        v = jnp.asarray(v, jnp.float32)
        return jnp.pad(v, ((0, 0), (0, M_pad - m)))[:, :, None]

    ld3, ud3, lb3, ub3 = to3(ld), to3(ud), to3(lb), to3(ub)

    vec_spec = pl.BlockSpec((None, TM, 1), lambda i, jt, b: (b, i, 0))
    if rhs_batched:
        rhs_spec = pl.BlockSpec((None, TM, TJ), lambda i, jt, b: (b, i, jt))
    else:
        # Shared parent: RHS block index ignores b; with b as the innermost grid
        # axis the same RHS tile is reused across the whole batch.
        rhs_spec = pl.BlockSpec((TM, TJ), lambda i, jt, b: (i, jt))
    out_spec = pl.BlockSpec((None, TM, TJ), lambda i, jt, b: (b, i, jt))

    kernel = functools.partial(_diag_backsub_kernel, bias_col=bias_col, tj=TJ, j_axis=1)
    lo, uo = pl.pallas_call(
        kernel,
        grid=(M_pad // TM, J_pad // TJ, B),
        in_specs=[vec_spec, vec_spec, vec_spec, vec_spec, rhs_spec, rhs_spec],
        out_specs=(out_spec, out_spec),
        out_shape=(jax.ShapeDtypeStruct((B, M_pad, J_pad), jnp.float32),) * 2,
        compiler_params=pltpu.CompilerParams(
            dimension_semantics=("parallel", "parallel", "arbitrary")),
    )(ld3, ud3, lb3, ub3, pu_aug, pd_aug)
    return lo, uo


# ---------------------------------------------------------------------------
# Kernel 3: generic tiled back-substitution step (dense L/U through parent).
#   Homogeneous form:  l = L@Pu + pos(L)@pdiff ,  u = U@Pu + neg(U)@pdiff
#   (pdiff = Pl_aug - Pu_aug, built once per Polygon and cached).
# ---------------------------------------------------------------------------
def _backsub_kernel(lc_ref, uc_ref, pu_ref, pd_ref, lo_ref, uo_ref, lacc, uacc,
                    *, k_axis):
    k_idx = pl.program_id(k_axis)

    @pl.when(k_idx == 0)
    def _():
        lacc[...] = jnp.zeros_like(lacc)
        uacc[...] = jnp.zeros_like(uacc)

    lc = lc_ref[...]            # (TM, TK)
    uc = uc_ref[...]
    pu = pu_ref[...]            # (TK, TJ)
    pd = pd_ref[...]

    lacc[...] += (jnp.dot(lc, pu, preferred_element_type=jnp.float32)
                  + jnp.dot(jnp.maximum(lc, 0.0), pd, preferred_element_type=jnp.float32))
    uacc[...] += (jnp.dot(uc, pu, preferred_element_type=jnp.float32)
                  + jnp.dot(jnp.minimum(uc, 0.0), pd, preferred_element_type=jnp.float32))

    @pl.when(k_idx == pl.num_programs(k_axis) - 1)
    def _():
        lo_ref[...] = lacc[...]
        uo_ref[...] = uacc[...]


def _backsub_aug_step(LA, UA, lhs_batched, parent):
    """One homogeneous back-substitution step through `parent`."""
    pu_aug, pd_aug, rhs_batched = parent._aug_rhs()
    K_pad, J_pad = pu_aug.shape[-2], pu_aug.shape[-1]
    if LA.shape[-1] != K_pad:
        raise ValueError(f"augmented K mismatch: {LA.shape[-1]} vs parent {K_pad}")
    vmem_cap, tm_cap, tk_cap, tj_cap, _ = _hw_caps()
    TK = _choose_tile(K_pad, 128, tk_cap)
    TJ = _choose_tile(J_pad, 128, tj_cap)

    if not rhs_batched:
        # Shared parent (e.g. broadcast affine weights): single 2-D RHS, batch
        # folded into M so the MXU sees dense rows and RHS is streamed once.
        if lhs_batched:
            B, M_pad, _ = LA.shape
            lhs_l = LA.reshape(B * M_pad, K_pad)
            lhs_u = UA.reshape(B * M_pad, K_pad)
        else:
            B, M_pad = None, LA.shape[0]
            lhs_l, lhs_u = LA, UA
        MT = lhs_l.shape[0]
        TM = _choose_tile(MT, 8, tm_cap)
        grid = (MT // TM, J_pad // TJ, K_pad // TK)
        lhs_spec = pl.BlockSpec((TM, TK), lambda i, jt, kt: (i, kt))
        rhs_spec = pl.BlockSpec((TK, TJ), lambda i, jt, kt: (kt, jt))
        out_spec = pl.BlockSpec((TM, TJ), lambda i, jt, kt: (i, jt))
        out_shape = (MT, J_pad)
        sems = ("parallel", "parallel", "arbitrary")
        k_axis = 2
        flops = 8 * MT * K_pad * J_pad
        bytes_acc = 4 * (2 * MT * K_pad * (J_pad // TJ)
                         + 2 * K_pad * J_pad * (MT // TM)
                         + 2 * MT * J_pad)
        args = (lhs_l, lhs_u, pu_aug, pd_aug)
    else:
        B = pu_aug.shape[0]
        if lhs_batched:
            if LA.shape[0] != B:
                raise ValueError("batch mismatch between child coefs and parent")
            M_pad = LA.shape[1]
            lhs_spec_fn = lambda TM_: pl.BlockSpec((None, TM_, TK),
                                                   lambda b, i, jt, kt: (b, i, kt))
        else:
            M_pad = LA.shape[0]
            lhs_spec_fn = lambda TM_: pl.BlockSpec((TM_, TK),
                                                   lambda b, i, jt, kt: (i, kt))
        TM = _choose_tile(M_pad, 8, tm_cap)
        lhs_spec = lhs_spec_fn(TM)
        grid = (B, M_pad // TM, J_pad // TJ, K_pad // TK)
        rhs_spec = pl.BlockSpec((None, TK, TJ), lambda b, i, jt, kt: (b, kt, jt))
        out_spec = pl.BlockSpec((None, TM, TJ), lambda b, i, jt, kt: (b, i, jt))
        out_shape = (B, M_pad, J_pad)
        sems = ("parallel", "parallel", "parallel", "arbitrary")
        k_axis = 3
        flops = 8 * B * M_pad * K_pad * J_pad
        bytes_acc = 4 * (2 * B * M_pad * K_pad * (J_pad // TJ)
                         + 2 * B * K_pad * J_pad * (M_pad // TM)
                         + 2 * B * M_pad * J_pad)
        args = (LA, UA, pu_aug, pd_aug)

    kernel = functools.partial(_backsub_kernel, k_axis=k_axis)
    lo, uo = pl.pallas_call(
        kernel,
        grid=grid,
        in_specs=[lhs_spec, lhs_spec, rhs_spec, rhs_spec],
        out_specs=(out_spec, out_spec),
        out_shape=(jax.ShapeDtypeStruct(out_shape, jnp.float32),) * 2,
        scratch_shapes=[pltpu.VMEM((TM, TJ), jnp.float32),
                        pltpu.VMEM((TM, TJ), jnp.float32)],
        compiler_params=pltpu.CompilerParams(
            dimension_semantics=sems,
            vmem_limit_bytes=_vmem_limit(TM, TK, TJ, vmem_cap)),
        cost_estimate=pl.CostEstimate(flops=int(flops), transcendentals=0,
                                      bytes_accessed=int(bytes_acc)),
    )(*args)

    if (not rhs_batched) and lhs_batched:
        lo = lo.reshape(B, M_pad, J_pad)
        uo = uo.reshape(B, M_pad, J_pad)
        return lo, uo, True
    return lo, uo, (lhs_batched or rhs_batched)


# ---------------------------------------------------------------------------
# Chain walks (bounds)
# ---------------------------------------------------------------------------
def _finish_chain(LA, UA, lhs_batched, start_parent, m, batch, last_j):
    p = start_parent
    while p is not None:
        LA, UA, lhs_batched = _backsub_aug_step(LA, UA, lhs_batched, p)
        last_j = p.k
        p = p.parent
    lb = LA[..., :m, last_j]
    ub = UA[..., :m, last_j]
    if not lhs_batched:
        lb = jnp.broadcast_to(lb[None], (batch, m))
        ub = jnp.broadcast_to(ub[None], (batch, m))
    return lb, ub


def _dense_chain_bounds(lc, uc, lb, ub, parent, batch):
    m, k = int(lc.shape[-2]), int(lc.shape[-1])
    lhs_batched = (lc.ndim == 3) or (lb.ndim == 2)
    if lhs_batched:
        if lc.ndim == 2:
            lc = jnp.broadcast_to(lc[None], (batch, m, k))
            uc = jnp.broadcast_to(uc[None], (batch, m, k))
        if lb.ndim == 1:
            lb = jnp.broadcast_to(lb[None], (batch, m))
            ub = jnp.broadcast_to(ub[None], (batch, m))
    M_pad = _round_up(m, 8)
    K_pad = _round_up(k + 1, 128)
    la = jnp.concatenate([lc, lb[..., None]], axis=-1)
    ua = jnp.concatenate([uc, ub[..., None]], axis=-1)
    pad = ((0, M_pad - m), (0, K_pad - (k + 1)))
    if lhs_batched:
        pad = ((0, 0),) + pad
    LA = jnp.pad(la, pad)
    UA = jnp.pad(ua, pad)
    return _finish_chain(LA, UA, lhs_batched, parent, m, batch, 0)


def _diag_chain_bounds(ld, ud, lb, ub, parent):
    batch, m = ld.shape
    LA, UA = _diag_aug_step(ld, ud, lb, ub, parent)
    return _finish_chain(LA, UA, True, parent.parent, m, batch, parent.k)


# ---------------------------------------------------------------------------
# Polygon (JAX mirror of the PyTorch dataclass)
# ---------------------------------------------------------------------------
class Polygon:
    def __init__(self, l_coefs, u_coefs, l_bias, u_bias, parent, *,
                 batch=None, _diag=None, _bounds=None):
        self.parent = parent
        self._aug_cache = None
        self._dense_cache = None
        self._l_bias_raw = jnp.asarray(l_bias, jnp.float32)
        self._u_bias_raw = jnp.asarray(u_bias, jnp.float32)

        if _diag is not None:
            ld, ud = _diag
            self._diag = (jnp.asarray(ld, jnp.float32), jnp.asarray(ud, jnp.float32))
            self._l_coefs_raw = None
            self._u_coefs_raw = None
            self.batch, self.m = (int(s) for s in self._diag[0].shape)
            self.k = self.m
        else:
            self._diag = None
            lc = jnp.asarray(l_coefs, jnp.float32)
            uc = jnp.asarray(u_coefs, jnp.float32)
            self._l_coefs_raw = lc
            self._u_coefs_raw = uc
            self.m, self.k = int(lc.shape[-2]), int(lc.shape[-1])
            if lc.ndim == 3:
                self.batch = int(lc.shape[0])
            elif self._l_bias_raw.ndim == 2:
                self.batch = int(self._l_bias_raw.shape[0])
            elif parent is not None:
                self.batch = parent.batch
            else:
                self.batch = 1 if batch is None else int(batch)

        if _bounds is not None:
            self.l_bound, self.u_bound = _bounds
        elif parent is None:
            self.l_bound = self._bcast_bias(self._l_bias_raw)
            self.u_bound = self._bcast_bias(self._u_bias_raw)
        elif self._diag is not None:
            # Diagonal polygon: first back-substitution is the VPU row-scale
            # kernel, then the generic MXU kernel walks the rest of the chain.
            self.l_bound, self.u_bound = _diag_chain_bounds(
                self._diag[0], self._diag[1],
                self._bcast_bias(self._l_bias_raw),
                self._bcast_bias(self._u_bias_raw), parent)
        else:
            self.l_bound, self.u_bound = _dense_chain_bounds(
                self._l_coefs_raw, self._u_coefs_raw,
                self._l_bias_raw, self._u_bias_raw, parent, self.batch)

    # ---- data-contract views ------------------------------------------------
    def _bcast_bias(self, v):
        if v.ndim == 1:
            return jnp.broadcast_to(v[None], (self.batch, self.m))
        return v

    def _dense_coefs(self):
        if self._dense_cache is None:
            if self._diag is not None:
                ld, ud = self._diag
                eye = jnp.eye(self.m, dtype=jnp.float32)[None]
                self._dense_cache = (eye * ld[:, :, None], eye * ud[:, :, None])
            else:
                lc, uc = self._l_coefs_raw, self._u_coefs_raw
                if lc.ndim == 2:
                    lc = jnp.broadcast_to(lc[None], (self.batch, self.m, self.k))
                    uc = jnp.broadcast_to(uc[None], (self.batch, self.m, self.k))
                self._dense_cache = (lc, uc)
        return self._dense_cache

    @property
    def l_coefs(self):
        return self._dense_coefs()[0]

    @property
    def u_coefs(self):
        return self._dense_coefs()[1]

    @property
    def l_bias(self):
        return self._bcast_bias(self._l_bias_raw)

    @property
    def u_bias(self):
        return self._bcast_bias(self._u_bias_raw)

    # ---- cached augmented RHS (built once per Polygon) -----------------------
    def _aug_rhs(self):
        """Returns (pu_aug, pdiff_aug, batched): padded homogeneous RHS
        [coefs | bias ; 0 | 1] with pdiff = pl_aug - pu_aug."""
        if self._aug_cache is None:
            if self._diag is not None:
                # TODO(synk): specialized column-scale kernel for diagonal
                # parents; dense fallback keeps the PyTorch semantics.
                lc, uc = self._dense_coefs()
                lb, ub = self.l_bias, self.u_bias
            else:
                lc, uc = self._l_coefs_raw, self._u_coefs_raw
                lb, ub = self._l_bias_raw, self._u_bias_raw
            batched = (lc.ndim == 3) or (lb.ndim == 2)
            if batched:
                if lc.ndim == 2:
                    lc = jnp.broadcast_to(lc[None], (self.batch, self.m, self.k))
                    uc = jnp.broadcast_to(uc[None], (self.batch, self.m, self.k))
                if lb.ndim == 1:
                    lb = jnp.broadcast_to(lb[None], (self.batch, self.m))
                    ub = jnp.broadcast_to(ub[None], (self.batch, self.m))
            m, k = self.m, self.k
            K_rows_pad = _round_up(m + 1, 128)
            J_pad = _round_up(k + 1, 128)

            def build(coefs, bias):
                top = jnp.concatenate([coefs, bias[..., None]], axis=-1)      # (..,m,k+1)
                homog = jnp.zeros(top.shape[:-2] + (1, k + 1), jnp.float32)
                homog = homog.at[..., 0, k].set(1.0)
                full = jnp.concatenate([top, homog], axis=-2)                 # (..,m+1,k+1)
                pad = ((0, K_rows_pad - (m + 1)), (0, J_pad - (k + 1)))
                if batched:
                    pad = ((0, 0),) + pad
                return jnp.pad(full, pad)

            pl_aug = build(lc, lb)
            pu_aug = build(uc, ub)
            self._aug_cache = (pu_aug, pl_aug - pu_aug, batched)
        return self._aug_cache

    # ---- API ------------------------------------------------------------------
    def evaluate(self):
        return self.l_bound, self.u_bound

    @staticmethod
    def create_from_input(input_tensor, eps):
        x = jnp.asarray(input_tensor, jnp.float32)
        batch = x.shape[0]
        size = int(np.prod(x.shape[1:])) if x.ndim > 1 else 1
        xf = x.reshape(batch, size)
        zeros = jnp.zeros((batch, size, 0), jnp.float32)
        return Polygon(zeros, zeros,
                       jnp.clip(xf - eps, 0.0, 1.0),
                       jnp.clip(xf + eps, 0.0, 1.0),
                       None)


# ---------------------------------------------------------------------------
# LeakyReLUTransformer (forward pass)
# ---------------------------------------------------------------------------
class LeakyReLUTransformer:
    def __init__(self, negative_slope, init_polygon):
        self.negative_slope = float(negative_slope)
        l_bound, u_bound = init_polygon.evaluate()
        # alpha[u > -l] = 1.0, else 0.0   (deterministic parameter init)
        self.alpha = (u_bound > -l_bound).astype(jnp.float32)

    def clamp(self):
        self.alpha = jnp.clip(self.alpha, 0.0, 1.0)

    def forward(self, x):
        l_bound, u_bound = x.evaluate()
        ld, ud, lb, ub = leaky_relaxation(l_bound, u_bound, self.alpha,
                                          self.negative_slope)
        # Keep the new polygon in diagonal form; the Polygon constructor routes
        # its bound chain through the VPU row-scale kernel. Dense eye*diag
        # coefficients are only materialized lazily via the .l_coefs property.
        return Polygon(None, None, lb, ub, parent=x, _diag=(ld, ud))


# ---------------------------------------------------------------------------
# numpy reference (mirrors the PyTorch math) for correctness checking
# ---------------------------------------------------------------------------
def _ref_backsub(lc, uc, lb, ub, plc, puc, plb, pub):
    lcp, lcn = np.maximum(lc, 0), np.minimum(lc, 0)
    ucp, ucn = np.maximum(uc, 0), np.minimum(uc, 0)
    lc_new = lcp @ plc + lcn @ puc
    uc_new = ucp @ puc + ucn @ plc
    lb_new = lb + (lcp * plb[:, None, :]).sum(-1) + (lcn * pub[:, None, :]).sum(-1)
    ub_new = ub + (ucp * pub[:, None, :]).sum(-1) + (ucn * plb[:, None, :]).sum(-1)
    return lc_new, uc_new, lb_new, ub_new


def _ref_relaxation(l, u, a, ns):
    is_neg = u <= 0
    is_pos = l >= 0
    crossing = ~(is_neg | is_pos)
    base = np.where(is_neg, ns, 1.0)
    denom = np.where(crossing, u - l, 1.0)
    slope = (u - ns * l) / denom
    slope_bias = l * (ns - slope)
    alpha_coef = a * (1.0 - ns) + ns
    if ns <= 1.0:
        ud = np.where(crossing, slope, base)
        ub = np.where(crossing, slope_bias, 0.0)
        ld = np.where(crossing, alpha_coef, base)
        lb = np.zeros_like(l)
    else:
        ld = np.where(crossing, slope, base)
        lb = np.where(crossing, slope_bias, 0.0)
        ud = np.where(crossing, alpha_coef, base)
        ub = np.zeros_like(l)
    return ld, ud, lb, ub


if __name__ == "__main__":
    key = jax.random.PRNGKey(0)
    batch, d_in, n = 2, 16, 8
    eps = 0.1
    negative_slope = 0.1

    k1, k2, k3, k4, k5 = jax.random.split(key, 5)
    x_in = jax.random.uniform(k1, (batch, d_in), dtype=jnp.float32)
    W = jax.random.normal(k2, (n, d_in), dtype=jnp.float32) * 0.5
    bvec = jax.random.normal(k3, (n,), dtype=jnp.float32) * 0.1

    # Input polygon, then a batch-shared affine polygon, then the leaky layer.
    p0 = Polygon.create_from_input(x_in, eps)
    p1 = Polygon(W, W, bvec, bvec, parent=p0)          # shared-weights fast path
    transformer = LeakyReLUTransformer(negative_slope, p1)
    out = transformer.forward(p1)

    # A dense per-batch polygon on top of the leaky layer: exercises the
    # diag-parent fallback, the batch-folded shared-RHS MXU path (through p1)
    # and the per-batch input-polygon step (through p0).
    m2 = 4
    C2 = jax.random.normal(k4, (batch, m2, n), dtype=jnp.float32)
    d2 = jax.random.normal(k5, (batch, m2), dtype=jnp.float32) * 0.1
    p2 = Polygon(C2, C2 + 0.05, d2, d2 + 0.05, parent=out)

    jax.block_until_ready((p1.l_bound, p1.u_bound,
                           out.l_bound, out.u_bound,
                           p2.l_bound, p2.u_bound))

    # ---------------- reference checks ----------------
    Wb = np.broadcast_to(np.asarray(W)[None], (batch, n, d_in)).astype(np.float32)
    bb = np.broadcast_to(np.asarray(bvec)[None], (batch, n)).astype(np.float32)
    zeros_in = np.zeros((batch, d_in, 0), np.float32)
    l0 = np.asarray(p0.l_bound)
    u0 = np.asarray(p0.u_bound)

    # (a) affine polygon bounds
    _, _, lb1_r, ub1_r = _ref_backsub(Wb, Wb, bb, bb, zeros_in, zeros_in, l0, u0)
    np.testing.assert_allclose(np.asarray(p1.l_bound), lb1_r, rtol=1e-4, atol=1e-4)
    np.testing.assert_allclose(np.asarray(p1.u_bound), ub1_r, rtol=1e-4, atol=1e-4)

    # (b) leaky-ReLU polygon (relaxation + diag row-scale + input step)
    p1_lb = np.asarray(p1.l_bound)
    p1_ub = np.asarray(p1.u_bound)
    alpha_np = np.asarray(transformer.alpha)
    ld_r, ud_r, lb_r, ub_r = _ref_relaxation(p1_lb, p1_ub, alpha_np, negative_slope)
    eye = np.eye(n, dtype=np.float32)[None]
    lC_r = eye * ld_r[:, :, None]
    uC_r = eye * ud_r[:, :, None]
    lC1, uC1, lbb_r, ubb_r = _ref_backsub(lC_r, uC_r, lb_r, ub_r, Wb, Wb, bb, bb)
    _, _, lbb_r, ubb_r = _ref_backsub(lC1, uC1, lbb_r, ubb_r, zeros_in, zeros_in, l0, u0)
    np.testing.assert_allclose(np.asarray(out.l_bound), lbb_r, rtol=1e-4, atol=1e-4)
    np.testing.assert_allclose(np.asarray(out.u_bound), ubb_r, rtol=1e-4, atol=1e-4)
    np.testing.assert_allclose(np.asarray(out.l_coefs), lC_r, rtol=1e-4, atol=1e-4)
    np.testing.assert_allclose(np.asarray(out.u_coefs), uC_r, rtol=1e-4, atol=1e-4)
    np.testing.assert_allclose(np.asarray(out.l_bias), lb_r, rtol=1e-4, atol=1e-4)
    np.testing.assert_allclose(np.asarray(out.u_bias), ub_r, rtol=1e-4, atol=1e-4)

    # (c) dense polygon on top of the leaky layer (full 3-step chain)
    lc2 = np.asarray(C2)
    uc2 = lc2 + 0.05
    lb2 = np.asarray(d2)
    ub2 = lb2 + 0.05
    s = _ref_backsub(lc2, uc2, lb2, ub2, lC_r, uC_r, lb_r, ub_r)
    s = _ref_backsub(s[0], s[1], s[2], s[3], Wb, Wb, bb, bb)
    _, _, lb3_r, ub3_r = _ref_backsub(s[0], s[1], s[2], s[3], zeros_in, zeros_in, l0, u0)
    np.testing.assert_allclose(np.asarray(p2.l_bound), lb3_r, rtol=1e-4, atol=1e-4)
    np.testing.assert_allclose(np.asarray(p2.u_bound), ub3_r, rtol=1e-4, atol=1e-4)

    print("KERNEL_OK")
</pallas_src>

<mosaic_0001>
module attributes {stable_mosaic.version = 11 : i64} {
  func.func @_backsub_kernel(%arg0: i32, %arg1: i32, %arg2: i32, %arg3: i32, %arg4: memref<8x128xf32, #tpu.memory_space<vmem>>, %arg5: memref<8x128xf32, #tpu.memory_space<vmem>>, %arg6: memref<1x128x128xf32, #tpu.memory_space<vmem>>, %arg7: memref<1x128x128xf32, #tpu.memory_space<vmem>>, %arg8: memref<1x8x128xf32, #tpu.memory_space<vmem>>, %arg9: memref<1x8x128xf32, #tpu.memory_space<vmem>>, %arg10: memref<8x128xf32, #tpu.memory_space<vmem>>, %arg11: memref<8x128xf32, #tpu.memory_space<vmem>>) attributes {dimension_semantics = [#tpu.dimension_semantics<parallel>, #tpu.dimension_semantics<parallel>, #tpu.dimension_semantics<parallel>, #tpu.dimension_semantics<arbitrary>], iteration_bounds = array<i64: 2, 1, 1, 1>, scalar_prefetch = 0 : i64, scratch_operands = 2 : i64, tpu.core_type = #tpu.core_type<tc>, window_params = [{transform_indices = @transform_0, window_bounds = array<i64: 8, 128>}, {transform_indices = @transform_1, window_bounds = array<i64: 8, 128>}, {transform_indices = @transform_2, window_bounds = array<i64: 1, 128, 128>}, {transform_indices = @transform_3, window_bounds = array<i64: 1, 128, 128>}, {transform_indices = @transform_4, window_bounds = array<i64: 1, 8, 128>}, {transform_indices = @transform_5, window_bounds = array<i64: 1, 8, 128>}]} {
    %c0_i32 = arith.constant 0 : i32
    %0 = arith.cmpi eq, %arg3, %c0_i32 : i32
    %1 = arith.extui %0 : i1 to i32
    %c0_i32_0 = arith.constant 0 : i32
    %2 = arith.cmpi ne, %1, %c0_i32_0 : i32
    scf.if %2 {
      %cst_25 = arith.constant 0.000000e+00 : f32
      %28 = vector.broadcast %cst_25 : f32 to vector<8x128xf32>
      %c0_26 = arith.constant 0 : index
      %c0_27 = arith.constant 0 : index
      %29 = vector.load %arg10[%c0_26, %c0_27] : memref<8x128xf32, #tpu.memory_space<vmem>>, vector<8x128xf32>
      tpu.vector_store %arg10[%c0_26, %c0_27], %28 {strides = array<i32>} : memref<8x128xf32, #tpu.memory_space<vmem>>, vector<8x128xf32>,
      %cst_28 = arith.constant 0.000000e+00 : f32
      %30 = vector.broadcast %cst_28 : f32 to vector<8x128xf32>
      %c0_29 = arith.constant 0 : index
      %c0_30 = arith.constant 0 : index
      %31 = vector.load %arg11[%c0_29, %c0_30] : memref<8x128xf32, #tpu.memory_space<vmem>>, vector<8x128xf32>
      tpu.vector_store %arg11[%c0_29, %c0_30], %30 {strides = array<i32>} : memref<8x128xf32, #tpu.memory_space<vmem>>, vector<8x128xf32>,
    } else {
    }
    %c0 = arith.constant 0 : index
    %c0_1 = arith.constant 0 : index
    %3 = vector.load %arg4[%c0, %c0_1] : memref<8x128xf32, #tpu.memory_space<vmem>>, vector<8x128xf32>
    %c0_2 = arith.constant 0 : index
    %c0_3 = arith.constant 0 : index
    %4 = vector.load %arg5[%c0_2, %c0_3] : memref<8x128xf32, #tpu.memory_space<vmem>>, vector<8x128xf32>
    %c0_4 = arith.constant 0 : index
    %c0_5 = arith.constant 0 : index
    %c0_6 = arith.constant 0 : index
    %5 = vector.load %arg6[%c0_4, %c0_5, %c0_6] : memref<1x128x128xf32, #tpu.memory_space<vmem>>, vector<1x128x128xf32>
    %6 = vector.shape_cast %5 : vector<1x128x128xf32> to vector<128x128xf32>
    %c0_7 = arith.constant 0 : index
    %c0_8 = arith.constant 0 : index
    %c0_9 = arith.constant 0 : index
    %7 = vector.load %arg7[%c0_7, %c0_8, %c0_9] : memref<1x128x128xf32, #tpu.memory_space<vmem>>, vector<1x128x128xf32>
    %8 = vector.shape_cast %7 : vector<1x128x128xf32> to vector<128x128xf32>
    %c0_10 = arith.constant 0 : index
    %c0_11 = arith.constant 0 : index
    %9 = vector.load %arg10[%c0_10, %c0_11] : memref<8x128xf32, #tpu.memory_space<vmem>>, vector<8x128xf32>
    %cst = arith.constant dense<0.000000e+00> : vector<8x128xf32>
    %10 = tpu.matmul %3, %6, %cst {dimension_numbers = #tpu.dot_dimension_numbers<[1], [0], [0], [1], [0, 0, 1, 1], [], []>} : vector<8x128xf32>, vector<128x128xf32>, vector<8x128xf32> -> vector<8x128xf32>
    %cst_12 = arith.constant 0.000000e+00 : f32
    %11 = vector.broadcast %cst_12 : f32 to vector<8x128xf32>
    %12 = arith.maximumf %3, %11 : vector<8x128xf32>
    %cst_13 = arith.constant dense<0.000000e+00> : vector<8x128xf32>
    %13 = tpu.matmul %12, %8, %cst_13 {dimension_numbers = #tpu.dot_dimension_numbers<[1], [0], [0], [1], [0, 0, 1, 1], [], []>} : vector<8x128xf32>, vector<128x128xf32>, vector<8x128xf32> -> vector<8x128xf32>
    %14 = arith.addf %10, %13 : vector<8x128xf32>
    %15 = arith.addf %9, %14 : vector<8x128xf32>
    %c0_14 = arith.constant 0 : index
    %c0_15 = arith.constant 0 : index
    %16 = vector.load %arg10[%c0_14, %c0_15] : memref<8x128xf32, #tpu.memory_space<vmem>>, vector<8x128xf32>
    tpu.vector_store %arg10[%c0_14, %c0_15], %15 {strides = array<i32>} : memref<8x128xf32, #tpu.memory_space<vmem>>, vector<8x128xf32>,
    %c0_16 = arith.constant 0 : index
    %c0_17 = arith.constant 0 : index
    %17 = vector.load %arg11[%c0_16, %c0_17] : memref<8x128xf32, #tpu.memory_space<vmem>>, vector<8x128xf32>
    %cst_18 = arith.constant dense<0.000000e+00> : vector<8x128xf32>
    %18 = tpu.matmul %4, %6, %cst_18 {dimension_numbers = #tpu.dot_dimension_numbers<[1], [0], [0], [1], [0, 0, 1, 1], [], []>} : vector<8x128xf32>, vector<128x128xf32>, vector<8x128xf32> -> vector<8x128xf32>
    %cst_19 = arith.constant 0.000000e+00 : f32
    %19 = vector.broadcast %cst_19 : f32 to vector<8x128xf32>
    %20 = arith.minimumf %4, %19 : vector<8x128xf32>
    %cst_20 = arith.constant dense<0.000000e+00> : vector<8x128xf32>
    %21 = tpu.matmul %20, %8, %cst_20 {dimension_numbers = #tpu.dot_dimension_numbers<[1], [0], [0], [1], [0, 0, 1, 1], [], []>} : vector<8x128xf32>, vector<128x128xf32>, vector<8x128xf32> -> vector<8x128xf32>
    %22 = arith.addf %18, %21 : vector<8x128xf32>
    %23 = arith.addf %17, %22 : vector<8x128xf32>
    %c0_21 = arith.constant 0 : index
    %c0_22 = arith.constant 0 : index
    %24 = vector.load %arg11[%c0_21, %c0_22] : memref<8x128xf32, #tpu.memory_space<vmem>>, vector<8x128xf32>
    tpu.vector_store %arg11[%c0_21, %c0_22], %23 {strides = array<i32>} : memref<8x128xf32, #tpu.memory_space<vmem>>, vector<8x128xf32>,
    %c0_i32_23 = arith.constant 0 : i32
    %25 = arith.cmpi eq, %arg3, %c0_i32_23 : i32
    %26 = arith.extui %25 : i1 to i32
    %c0_i32_24 = arith.constant 0 : i32
    %27 = arith.cmpi ne, %26, %c0_i32_24 : i32
    scf.if %27 {
      %c0_25 = arith.constant 0 : index
      %c0_26 = arith.constant 0 : index
      %28 = vector.load %arg10[%c0_25, %c0_26] : memref<8x128xf32, #tpu.memory_space<vmem>>, vector<8x128xf32>
      %c0_27 = arith.constant 0 : index
      %c0_28 = arith.constant 0 : index
      %c0_29 = arith.constant 0 : index
      %29 = vector.load %arg8[%c0_27, %c0_28, %c0_29] : memref<1x8x128xf32, #tpu.memory_space<vmem>>, vector<1x8x128xf32>
      %30 = vector.shape_cast %29 : vector<1x8x128xf32> to vector<8x128xf32>
      %31 = vector.shape_cast %28 : vector<8x128xf32> to vector<1x8x128xf32>
      tpu.vector_store %arg8[%c0_27, %c0_28, %c0_29], %31 {strides = array<i32>} : memref<1x8x128xf32, #tpu.memory_space<vmem>>, vector<1x8x128xf32>,
      %c0_30 = arith.constant 0 : index
      %c0_31 = arith.constant 0 : index
      %32 = vector.load %arg11[%c0_30, %c0_31] : memref<8x128xf32, #tpu.memory_space<vmem>>, vector<8x128xf32>
      %c0_32 = arith.constant 0 : index
      %c0_33 = arith.constant 0 : index
      %c0_34 = arith.constant 0 : index
      %33 = vector.load %arg9[%c0_32, %c0_33, %c0_34] : memref<1x8x128xf32, #tpu.memory_space<vmem>>, vector<1x8x128xf32>
      %34 = vector.shape_cast %33 : vector<1x8x128xf32> to vector<8x128xf32>
      %35 = vector.shape_cast %32 : vector<8x128xf32> to vector<1x8x128xf32>
      tpu.vector_store %arg9[%c0_32, %c0_33, %c0_34], %35 {strides = array<i32>} : memref<1x8x128xf32, #tpu.memory_space<vmem>>, vector<1x8x128xf32>,
    } else {
    }
    return
  }
  func.func @transform_0(%arg0: i32, %arg1: i32, %arg2: i32, %arg3: i32) -> (i32, i32) {
    %c0_i32 = arith.constant 0 : i32
    return %arg1, %arg3 : i32, i32
  }
  func.func @transform_1(%arg0: i32, %arg1: i32, %arg2: i32, %arg3: i32) -> (i32, i32) {
    %c0_i32 = arith.constant 0 : i32
    return %arg1, %arg3 : i32, i32
  }
  func.func @transform_2(%arg0: i32, %arg1: i32, %arg2: i32, %arg3: i32) -> (i32, i32, i32) {
    %c0_i32 = arith.constant 0 : i32
    return %arg0, %arg3, %arg2 : i32, i32, i32
  }
  func.func @transform_3(%arg0: i32, %arg1: i32, %arg2: i32, %arg3: i32) -> (i32, i32, i32) {
    %c0_i32 = arith.constant 0 : i32
    return %arg0, %arg3, %arg2 : i32, i32, i32
  }
  func.func @transform_4(%arg0: i32, %arg1: i32, %arg2: i32, %arg3: i32) -> (i32, i32, i32) {
    %c0_i32 = arith.constant 0 : i32
    return %arg0, %arg1, %arg2 : i32, i32, i32
  }
  func.func @transform_5(%arg0: i32, %arg1: i32, %arg2: i32, %arg3: i32) -> (i32, i32, i32) {
    %c0_i32 = arith.constant 0 : i32
    return %arg0, %arg1, %arg2 : i32, i32, i32
  }
}

</mosaic_0001>

<bundles_post_ra>
// kernel: tpu_custom_call.1
= control target key start
LH: loop header
LB: loop body
LE: loop exit
PB: predicated region body
PF: predicated region fallthrough
CT: control target
= control target key end

     0   :  { %s2053_s0 = inlined_call_operand.hbm [shape: f32[8,128], index: 0, kind: input, shape index: {}]   ;;  %s2054_s1 = inlined_call_operand.hbm [shape: f32[8,128], index: 1, kind: input, shape index: {}]   ;;  %s2055_s2 = inlined_call_operand.hbm [shape: f32[2,128,128], index: 2, kind: input, shape index: {}]   ;;  %s2056_s3 = inlined_call_operand.hbm [shape: f32[2,128,128], index: 3, kind: input, shape index: {}]   ;;  %s2057_s4 = inlined_call_operand.hbm [shape: f32[2,8,128], index: 4, kind: output, shape index: {0}]   ;;  %s2058_s5 = inlined_call_operand.hbm [shape: f32[2,8,128], index: 5, kind: output, shape index: {1}]  }
   0x1   :  { %2075 = sst [smem:[#allocation25_spill]] %s2053_s0 }
   0x2   :  { %2076 = sst [smem:[#allocation26_spill]] %s2055_s2 }
   0x3   :  { %2077 = sst [smem:[#allocation27_spill]] %s2058_s5 }
   0x4   :  { %11 = vsyncpa [#allocation5], 0 }
   0x5   :  { %12 = vsyncpa [#allocation8], 0 }
   0x6   :  { %13 = vsyncpa [#allocation6], 0 }
   0x7   :  { %15 = vsyncpa [#allocation6 + $0x1], 0 }
   0x8   :  { %16 = vsyncpa [#allocation13], 0 }
   0x9   :  { %18 = vsyncpa [#allocation13 + $0x1], 0  ;;  %s1642_s18 = smov 0   ;;  %s1644_s19 = smov 0  }
   0xa   :  { %s1646_s20 = smov 0   ;;  %s1648_s21 = smov 0  }
   0xb   :  { %s1650_s22 = smov 0   ;;  %s1652_s23 = smov 0  }
   0xc LB: > { %2078 = sst [smem:[#allocation19_spill]] %s1579_s18  ;;  %s1673_s24 = sadd.s32 4294967295, %s1599_s23   ;;  %s1599_s23 = sphi %s1652_s23, %s24_s23   ;;  %s1595_s22 = sphi %s1650_s22, %s2122_s22   ;;  %s1591_s21 = sphi %s1648_s21, %s2121_s21   ;;  %s1587_s20 = sphi %s1646_s20, %s2117_s20   ;;  %s1583_s19 = sphi %s1644_s19, %s2120_s19   ;;  %s1579_s18 = sphi %s1642_s18, %s2119_s18  }
   0xd   : > { %2079 = sst [smem:[#allocation20_spill]] %s1587_s20  ;;  %s929_s25 = sadd.s32 4294967294, %s1599_s23  }
   0xe   : > { %2080 = sst [smem:[#allocation21_spill]] %s1599_s23  ;;  %s117_s26 = sadd.s32 1, %s1587_s20 }
   0xf   : > { %p124_p0 = scmp.ne.s32.totalorder %s1587_s20, %s1583_s19  ;;  %p125_p1 = scmp.eq.s32.totalorder %s1599_s23, 0 }
  0x10   : > { %p130_p2 = scmp.ne.s32.totalorder %s1583_s19, %s1579_s18  ;;  %p2059_p3 = scmp.eq.s32.totalorder %s1673_s24, 0 }
  0x11   : > { %p188_p4 = scmp.eq.s32.totalorder %s1673_s24, 1  ;;  %p1684_p5 = por %p125_p1, %p124_p0 }
  0x12   : > { %p194_p6 = scmp.eq.s32.totalorder %s929_s25, 1  ;;  %p1690_p7 = por %p2059_p3, %p130_p2 }
  0x13   : > { %p1694_p8 = por %p188_p4, %p124_p0  ;;  %p930_p10 = scmp.ge.s32.totalorder %s1599_s23, 1 }
  0x14   : > { %s2082_s28 = scalar_select %p1690_p7, 1, 0 }
  0x15   : > { %s2083_s29 = scalar_select %p1694_p8, 1, 0 }
  0x16   : > { %p1698_p9 = por %p194_p6, %p130_p2  ;;  %p231_p11 = scmp.lt.s32.totalorder %s1599_s23, 3 }
  0x17   : > { %s1601_s7 = smov [#allocation4]   ;;  %p1302_p1 = scmp.lt.s32.totalorder %s1599_s23, 2 }
  0x18   : > { %s2084_s30 = scalar_select %p1698_p9, 1, 0 }
  0x19   : > { %p1705_p13 = pnand %p930_p10, %p231_p11  ;;  %s247_s8 = sshll.u32 %s1601_s7, 4  ;;  %s248_s8 = int_to_ptr.vmem [resolvable:$true] %s247_s8 }
  0x1a   : > { %2085 = sst [smem:[#allocation22_spill]] %s2084_s30  ;;  %p1714_p4 = pnand %p1302_p1, %p1684_p5 }
  0x1b   : > { %s2086_s6 = scalar_select %p1705_p13, 1, 0 }
  0x1c   : > { %p1279_p0 = pneg %p1705_p13  ;;  %s50_s11 = sadd.s32 1, %s1595_s22 }
  0x1d   : > { %s2087_s9 = scalar_select %p1714_p4, 1, 0 }
  0x1e   : > { %p1720_p2 = pnand %p1279_p0, %p2059_p3  ;;  %p1725_p6 = scmp.ge.s32.totalorder %s50_s11, 2 }
  0x1f   : > { %s2090_s0 = sld [smem:[#allocation25_spill]] }
  0x20   : > { %s2089_s12 = scalar_select %p1725_p6, 1, 0 }
  0x21   : > { %p2065_p10 = pneg %p1720_p2 }
  0x25   : > { %s1361_s16 = scalar_lea.hbm %s2090_s0, 128 }
  0x26   : > { %p1362_p5 = scmp.ne.s32.totalorder %s2090_s0, %s1361_s16  ;;  %p1368_p0 = scmp.lt.u32.totalorder %s1361_s16, %s2090_s0 }
  0x28   : > { %p1364_p11 = pnand %p2065_p10, %p1362_p5 }
  0x2a   : > { %p1365_p1 = pneg %p1364_p11 }
  0x2c   : > { %p1370_p12 = pnand %p1368_p0, %p1365_p1 }
  0x2e   : > { %1373 = shalt.err (!%p1370_p12)
}
  0x2f   : > { %s1374_s13 = scalar_lea.vmem %s248_s8, 128  ;;  %p1382_p7 = scmp.lt.s32.totalorder %s248_s8, %s248_s8 }
  0x30   : > { %p1375_p3 = scmp.ne.s32.totalorder %s248_s8, %s1374_s13  ;;  %p1383_p13 = scmp.lt.s32.totalorder %s1374_s13, %s1374_s13 }
  0x32   : > { %p1377_p9 = pnand %p1375_p3, %p2065_p10  ;;  %p1384_p4 = por %p1383_p13, %p1382_p7 }
  0x34   : > { %p1378_p8 = pneg %p1377_p9 }
  0x36   : > { %p1385_p6 = pnand %p1384_p4, %p1378_p8 }
  0x38   : > { %1388 = shalt.err (!%p1385_p6)
}
  0x39   : > { %1282 = dma.hbm_to_vmem [thread:$0]  (!%p1720_p2), %s2090_s0, 128, %s248_s8, [#allocation5]  }
  0x3a   : > { %p2091_p3 = scmp.ne.s32.totalorder %s2089_s12, 0  ;;  %s274_s13 = sand.u32 1, %s1587_s20  }
  0x3b   : > { %s1759_s17 = sshll.u32 %s274_s13, 7  ;;  %s2064_s25 = sshll.u32 %s1595_s22, 11 }
  0x3c   : > { %s2124_s11 = smov (%p2091_p3, %s50_s11), 0  ;;  %s276_s27 = scalar_lea.vmem [#allocation9], %s1759_s17 }
  0x3d   : > { %2092 = sst [smem:[#allocation23_spill]] %s2124_s11  ;;  %s110_s16 = ssub.s32 %s1595_s22, %s2124_s11 }
  0x3e   : > { %p115_p7 = scmp.eq.s32.totalorder %s110_s16, 0  ;;  %s286_s7 = sshll.u32 %s276_s27, 4  ;;  %s1775_s7 = int_to_ptr.vmem [resolvable:$true] %s286_s7 }
  0x3f   : > { %s2094_s2 = sld [smem:[#allocation26_spill]]  ;;  %s2095_s13 = sand.u32 1, %s1599_s23  }
  0x40   : > { %s1766_s14 = scalar_select %p115_p7, %s1587_s20, %s117_s26  }
  0x41   : > { %s1779_s16 = scalar_lea.sflag [#allocation5], %s2095_s13  ;;  %p2096_p9 = scmp.ne.s32.totalorder %s2087_s9, 0 }
  0x42   : > { %2093 = sst [smem:[#allocation24_spill]] %s1766_s14 }
  0x43   : > { %p2073_p12 = pneg %p2096_p9 }
  0x45   : > { %s1773_s12 = scalar_lea.hbm %s2094_s2, %s2064_s25  ;;  %s1394_s15 = scalar_lea.hbm %s2094_s2, 4096 }
  0x46   : > { %s1389_s0 = scalar_lea.hbm %s1773_s12, 2048  ;;  %p1395_p6 = scmp.lt.u32.totalorder %s1773_s12, %s2094_s2 }
  0x47   : > { %p1390_p8 = scmp.ne.s32.totalorder %s1773_s12, %s1389_s0  ;;  %p1396_p5 = scmp.lt.u32.totalorder %s1394_s15, %s1389_s0 }
  0x48   : > { %p1398_p1 = scmp.lt.u32.totalorder %s1389_s0, %s1773_s12 }
  0x49   : > { %p1392_p13 = pnand %p2073_p12, %p1390_p8  ;;  %p1397_p11 = por %p1396_p5, %p1395_p6 }
  0x4b   : > { %p1393_p4 = pneg %p1392_p13  ;;  %p1399_p0 = por %p1398_p1, %p1397_p11 }
  0x4d   : > { %p1400_p3 = pnand %p1399_p0, %p1393_p4 }
  0x4f   : > { %1403 = shalt.err (!%p1400_p3)
}
  0x50   : > { %s1404_s13 = scalar_lea.vmem %s1775_s7, 2048  ;;  %s1602_s26 = smov [#allocation9]  }
  0x51   : > { %p1405_p7 = scmp.ne.s32.totalorder %s1775_s7, %s1404_s13  ;;  %s1409_s27 = sshll.u32 %s1602_s26, 4  ;;  %s1410_s27 = int_to_ptr.vmem [resolvable:$false] %s1409_s27 }
  0x52   : > { %s1411_s25 = scalar_lea.vmem %s1410_s27, 4096  ;;  %p1412_p10 = scmp.lt.s32.totalorder %s1775_s7, %s1410_s27 }
  0x53   : > { %p1407_p8 = pnand %p1405_p7, %p2073_p12  ;;  %p1413_p6 = scmp.lt.s32.totalorder %s1411_s25, %s1404_s13 }
  0x55   : > { %p1408_p13 = pneg %p1407_p8  ;;  %p1414_p5 = por %p1413_p6, %p1412_p10 }
  0x57   : > { %p1415_p11 = pnand %p1414_p5, %p1408_p13 }
  0x59   : > { %1418 = shalt.err (!%p1415_p11)
}
  0x5a   : > { %s1603_s0 = smov 128   ;;  %s1604_s15 = smov 8  }
  0x5b   : > { %1289 = dma.hbm_to_vmem [thread:$0]  (!%p2096_p9), %s1773_s12, 2048, %s1775_s7, %s1779_s16, %s1603_s0, %s1603_s0, %s1604_s15  }
  0x5c   : > { %s1605_s8 = smov [#allocation7]   ;;  %s2097_s13 = sshll.u32 %s1595_s22, 11 }
  0x5d   : > { %s261_s26 = sshll.u32 %s1605_s8, 4  ;;  %s1815_s2 = scalar_lea.hbm %s2056_s3, %s2097_s13  ;;  %s262_s26 = int_to_ptr.vmem [resolvable:$true] %s261_s26 }
  0x5e   : > { %s300_s11 = scalar_lea.vmem [#allocation10], %s1759_s17  ;;  %s1419_s30 = scalar_lea.hbm %s2054_s1, 128 }
  0x5f   : > { %s310_s14 = sshll.u32 %s300_s11, 4  ;;  %p1420_p10 = scmp.ne.s32.totalorder %s2054_s1, %s1419_s30  ;;  %s1838_s14 = int_to_ptr.vmem [resolvable:$true] %s310_s14 }
  0x60   : > { %p2098_p4 = pneg %p1720_p2  ;;  %p1426_p3 = scmp.lt.u32.totalorder %s1419_s30, %s2054_s1 }
  0x62   : > { %p1422_p1 = pnand %p1420_p10, %p2098_p4 }
  0x64   : > { %p1423_p0 = pneg %p1422_p1 }
  0x66   : > { %p1428_p7 = pnand %p1426_p3, %p1423_p0 }
  0x68   : > { %1431 = shalt.err (!%p1428_p7)
}
  0x69   : > { %s1432_s17 = scalar_lea.vmem %s262_s26, 128  ;;  %p2099_p13 = pmov %p2098_p4 }
  0x6a   : > { %p1433_p8 = scmp.ne.s32.totalorder %s262_s26, %s1432_s17  ;;  %p1440_p11 = scmp.lt.s32.totalorder %s262_s26, %s262_s26 }
  0x6b   : > { %p1441_p12 = scmp.lt.s32.totalorder %s1432_s17, %s1432_s17 }
  0x6c   : > { %p1435_p6 = pnand %p1433_p8, %p2099_p13 }
  0x6d   : > { %p1442_p9 = por %p1441_p12, %p1440_p11 }
  0x6e   : > { %p1436_p5 = pneg %p1435_p6 }
  0x70   : > { %p1443_p4 = pnand %p1442_p9, %p1436_p5 }
  0x72   : > { %1446 = shalt.err (!%p1443_p4)
}
  0x73   : > { %1285 = dma.hbm_to_vmem [thread:$0]  (!%p1720_p2), %s2054_s1, 128, %s262_s26, [#allocation8]  }
  0x74   : > { %s1447_s20 = scalar_lea.hbm %s1815_s2, 2048  ;;  %p2100_p1 = scmp.ne.s32.totalorder %s2087_s9, 0 }
  0x75   : > { %p1448_p10 = scmp.ne.s32.totalorder %s1815_s2, %s1447_s20  ;;  %s1452_s10 = scalar_lea.hbm %s2056_s3, 4096 }
  0x76   : > { %p2101_p0 = pneg %p2100_p1  ;;  %p1453_p3 = scmp.lt.u32.totalorder %s1815_s2, %s2056_s3 }
  0x77   : > { %p1454_p7 = scmp.lt.u32.totalorder %s1452_s10, %s1447_s20  ;;  %p1456_p13 = scmp.lt.u32.totalorder %s1447_s20, %s1815_s2 }
  0x78   : > { %p1450_p12 = pnand %p1448_p10, %p2101_p0 }
  0x79   : > { %p1455_p8 = por %p1454_p7, %p1453_p3 }
  0x7a   : > { %p1451_p9 = pneg %p1450_p12 }
  0x7b   : > { %p1457_p2 = por %p1456_p13, %p1455_p8 }
  0x7d   : > { %p1458_p6 = pnand %p1457_p2, %p1451_p9 }
  0x7f   : > { %1461 = shalt.err (!%p1458_p6)
}
  0x80   : > { %s1462_s26 = scalar_lea.vmem %s1838_s14, 2048  ;;  %p2102_p11 = pmov %p2101_p0 }
  0x81   : > { %p1463_p5 = scmp.ne.s32.totalorder %s1838_s14, %s1462_s26  ;;  %s1606_s13 = smov [#allocation10]  }
  0x82   : > { %s1467_s27 = sshll.u32 %s1606_s13, 4  ;;  %s1468_s27 = int_to_ptr.vmem [resolvable:$false] %s1467_s27 }
  0x83   : > { %p1465_p4 = pnand %p1463_p5, %p2102_p11  ;;  %s1469_s25 = scalar_lea.vmem %s1468_s27, 4096 }
  0x84   : > { %p1470_p0 = scmp.lt.s32.totalorder %s1838_s14, %s1468_s27  ;;  %p1471_p12 = scmp.lt.s32.totalorder %s1469_s25, %s1462_s26 }
  0x85   : > { %p1466_p10 = pneg %p1465_p4 }
  0x86   : > { %p1472_p3 = por %p1471_p12, %p1470_p0 }
  0x88   : > { %p1473_p7 = pnand %p1472_p3, %p1466_p10 }
  0x8a   : > { %1476 = shalt.err (!%p1473_p7)
}
  0x8b   : > { %1292 = dma.hbm_to_vmem [thread:$0]  (!%p2100_p1), %s1815_s2, 2048, %s1838_s14, %s1779_s16, %s1603_s0, %s1603_s0, %s1604_s15  }
  0x8c   : > { %p2103_p9 = scmp.ne.s32.totalorder %s2086_s6, 0 }
  0x8d   : > { %p2104_p8 = scmp.eq.s32.totalorder (!%p2103_p9), %s1673_s24, 0 }
  0x8e   : > { %322 = sbr.rel (%p2103_p9) target bundleno = 474 (0x1da), region = 36 }
  0x95   : > { %1558 = dma.done.wait (%p2104_p8), [#allocation5], 128   ;;  %p2105_p13 = pmov %p2104_p8 }
  0x96   : > { %p2106_p2 = pmov %p2104_p8 }
  0x97   : > { %1560 = vsyncadd (%p2105_p13), [#allocation5], 4294967168 }
  0x98   : > { %1562 = dma.done.wait (%p2106_p2), [#allocation8], 128   ;;  %p2107_p6 = pmov %p2106_p2 }
  0x99   : > { %s332_s9 = sand.u32 1, %s1673_s24   ;;  %s1879_s2 = sand.u32 1, %s1583_s19  }
  0x9a   : > { %1564 = vsyncadd (%p2107_p6), [#allocation8], 4294967168  ;;  %s943_s6 = sshll.u32 %s1879_s2, 7  ;;  %s333_s14 = scalar_lea.sflag [#allocation5], %s332_s9 }
  0x9b   : > { %s1882_s16 = scalar_lea.vmem [#allocation9], %s943_s6  ;;  %p2108_p1 = scmp.ne.s32.totalorder %s2082_s28, 0 }
  0x9d   : > { %1566 = dma.done.wait (%p2108_p1), %s333_s14, 4096  }
  0x9e   : > { %1568 = vsyncadd (%p2108_p1), %s333_s14, 4294963200  ;;  %v1607_v0 = vmov 0.0|0.0   ;;  %vm1608_vm0 = vmmov 0   ;;  %v1609_v1 = vmov 0.0   ;;  %s1894_s24 = scalar_lea.vmem [#allocation10], %s943_s6  ;;  %v1924_v26 = vld [vmem:[#allocation4] sm:$0xff] }
  0x9f   : > { %1163 = vmatprep.subr.bf16.mxu0 %v1607_v0  ;;  %1211 = vmatprep.subr.bf16.mxu1 %v1607_v0  ;;  %v408_v2 = vld [vmem:[%s1894_s24] sm:$0xff]  ;;  %v409_v3 = vld [vmem:[%s1894_s24 + $0x8] sm:$0xff]  ;;  %v410_v4 = vld [vmem:[%s1894_s24 + $0x10] sm:$0xff]  ;;  %v425_v30 = vmax.f32 %v1924_v26, 0.0  ;;  %s945_s28 = sshll.u32 %s1879_s2, 3  ;;  %s949_s17 = sshll.u32 %s1591_s21, 7 }
  0xa0   : > { %1055 = vmatprep.mubr.msk.f32.mxu0 %vm1608_vm0, %v1609_v1  ;;  %1125 = vmatprep.mubr.msk.f32.mxu1 %vm1608_vm0, %v1609_v1  ;;  %v1164_v5 = vpack.c.bf16 %v409_v3, %v408_v2  ;;  %v411_v6 = vld [vmem:[%s1894_s24 + $0x18] sm:$0xff]  ;;  %v412_v8 = vld [vmem:[%s1894_s24 + $0x20] sm:$0xff]  ;;  %v413_v9 = vld [vmem:[%s1894_s24 + $0x28] sm:$0xff]  ;;  %s374_s0 = scalar_lea.vmem [#allocation11], %s945_s28  ;;  %s381_s7 = scalar_lea.vmem [#allocation12], %s945_s28 }
  0xa1   : > { %v1167_v7 = vpack.c.bf16 %v411_v6, %v410_v4  ;;  %v1170_v10 = vpack.c.bf16 %v413_v9, %v412_v8  ;;  %v414_v11 = vld [vmem:[%s1894_s24 + $0x30] sm:$0xff]  ;;  %v415_v12 = vld [vmem:[%s1894_s24 + $0x38] sm:$0xff]  ;;  %v416_v14 = vld [vmem:[%s1894_s24 + $0x40] sm:$0xff]  ;;  %s740_s15 = sshll.u32 %s374_s0, 4  ;;  %s755_s12 = sshll.u32 %s381_s7, 4  ;;  %s1972_s15 = int_to_ptr.vmem [resolvable:$true] %s740_s15  ;;  %s1974_s12 = int_to_ptr.vmem [resolvable:$true] %s755_s12 }
  0xa2   : > { %1165 = vmatpush3.bf16.msra.mxu0 %v1164_v5  ;;  %1213 = vmatpush3.bf16.msra.mxu1 %v1164_v5  ;;  %v1173_v13 = vpack.c.bf16 %v415_v12, %v414_v11  ;;  %v417_v15 = vld [vmem:[%s1894_s24 + $0x48] sm:$0xff]  ;;  %v418_v17 = vld [vmem:[%s1894_s24 + $0x50] sm:$0xff]  ;;  %v419_v18 = vld [vmem:[%s1894_s24 + $0x58] sm:$0xff]  ;;  %s1979_s20 = scalar_lea.hbm %s2057_s4, %s949_s17  ;;  %s2109_s10 = sld [smem:[#allocation27_spill]] }
  0xa3   : > { %1166 = vmatprep.subr.bf16.mxu0 %v1607_v0  ;;  %1214 = vmatprep.subr.bf16.mxu1 %v1607_v0  ;;  %v1176_v16 = vpack.c.bf16 %v417_v15, %v416_v14  ;;  %v1179_v19 = vpack.c.bf16 %v419_v18, %v418_v17  ;;  %v420_v20 = vld [vmem:[%s1894_s24 + $0x60] sm:$0xff]  ;;  %v421_v21 = vld [vmem:[%s1894_s24 + $0x68] sm:$0xff]  ;;  %v422_v23 = vld [vmem:[%s1894_s24 + $0x70] sm:$0xff]  ;;  %s720_s21 = scalar_lea.sflag [#allocation6], %s1879_s2  ;;  %s1477_s8 = scalar_lea.vmem %s1972_s15, 128 }
  0xa4   : > { %v1182_v22 = vpack.c.bf16 %v421_v21, %v420_v20  ;;  %v423_v24 = vld [vmem:[%s1894_s24 + $0x78] sm:$0xff]  ;;  %v392_v28 = vld [vmem:[%s1882_s16] sm:$0xff]  ;;  %v393_v29 = vld [vmem:[%s1882_s16 + $0x8] sm:$0xff]  ;;  %p1478_p5 = scmp.ne.s32.totalorder %s1972_s15, %s1477_s8  ;;  %p2110_p11 = scmp.ne.s32.totalorder %s2083_s29, 0 }
  0xa5   : > { %v1185_v25 = vpack.c.bf16 %v423_v24, %v422_v23  ;;  %v1926_v27 = vld [vmem:[#allocation7] sm:$0xff]  ;;  %v1188_v32 = vpack.c.bf16 %v393_v29, %v392_v28  ;;  %v394_v33 = vld [vmem:[%s1882_s16 + $0x10] sm:$0xff]  ;;  %v396_v36 = vld [vmem:[%s1882_s16 + $0x20] sm:$0xff]  ;;  %s1610_s26 = smov [#allocation11]  }
  0xa6   : > { %1168 = vmatpush3.bf16.msra.mxu0 %v1167_v7  ;;  %1216 = vmatpush3.bf16.msra.mxu1 %v1167_v7  ;;  %v569_v31 = vmin.f32 %v1926_v27, 0.0  ;;  %v395_v34 = vld [vmem:[%s1882_s16 + $0x18] sm:$0xff]  ;;  %v397_v37 = vld [vmem:[%s1882_s16 + $0x28] sm:$0xff]  ;;  %v398_v39 = vld [vmem:[%s1882_s16 + $0x30] sm:$0xff]  ;;  %p1479_p4 = pnand %p1478_p5, %p2110_p11  ;;  %s1481_s13 = sshll.u32 %s1610_s26, 4  ;;  %s1482_s13 = int_to_ptr.vmem [resolvable:$false] %s1481_s13 }
  0xa7   : > { %1169 = vmatprep.subr.bf16.mxu0 %v1607_v0  ;;  %1217 = vmatprep.subr.bf16.mxu1 %v1607_v0  ;;  %v1191_v35 = vpack.c.bf16 %v395_v34, %v394_v33  ;;  %v1194_v38 = vpack.c.bf16 %v397_v37, %v396_v36  ;;  %v399_v40 = vld [vmem:[%s1882_s16 + $0x38] sm:$0xff]  ;;  %v400_v42 = vld [vmem:[%s1882_s16 + $0x40] sm:$0xff]  ;;  %v401_v43 = vld [vmem:[%s1882_s16 + $0x48] sm:$0xff]  ;;  %s1483_s27 = scalar_lea.vmem %s1482_s13, 256  ;;  %p1484_p0 = scmp.lt.s32.totalorder %s1972_s15, %s1482_s13 }
  0xa8   : > { %v1197_v41 = vpack.c.bf16 %v399_v40, %v398_v39  ;;  %v1200_v44 = vpack.c.bf16 %v401_v43, %v400_v42  ;;  %v402_v45 = vld [vmem:[%s1882_s16 + $0x50] sm:$0xff]  ;;  %v403_v46 = vld [vmem:[%s1882_s16 + $0x58] sm:$0xff]  ;;  %v404_v48 = vld [vmem:[%s1882_s16 + $0x60] sm:$0xff]  ;;  %s1984_s11 = scalar_lea.hbm %s2109_s10, %s949_s17  ;;  %p1480_p10 = pneg %p1479_p4 }
  0xa9   : > { %v1203_v47 = vpack.c.bf16 %v403_v46, %v402_v45  ;;  %v405_v49 = vld [vmem:[%s1882_s16 + $0x68] sm:$0xff]  ;;  %v406_v51 = vld [vmem:[%s1882_s16 + $0x70] sm:$0xff]  ;;  %v407_v52 = vld [vmem:[%s1882_s16 + $0x78] sm:$0xff]  ;;  %p1485_p12 = scmp.lt.s32.totalorder %s1483_s27, %s1477_s8 }
  0xaa   : > { %1171 = vmatpush3.bf16.msra.mxu0 %v1170_v10  ;;  %1219 = vmatpush3.bf16.msra.mxu1 %v1170_v10  ;;  %v1206_v50 = vpack.c.bf16 %v405_v49, %v404_v48  ;;  %v1209_v53 = vpack.c.bf16 %v407_v52, %v406_v51 }
  0xab   : > { %1172 = vmatprep.subr.bf16.mxu0 %v1607_v0  ;;  %1220 = vmatprep.subr.bf16.mxu1 %v1607_v0  ;;  %p1486_p3 = por %p1485_p12, %p1484_p0 }
  0xad   : > { %p1487_p7 = pnand %p1486_p3, %p1480_p10 }
  0xae   : > { %1174 = vmatpush3.bf16.msra.mxu0 %v1173_v13  ;;  %1222 = vmatpush3.bf16.msra.mxu1 %v1173_v13 }
  0xaf   : > { %1175 = vmatprep.subr.bf16.mxu0 %v1607_v0  ;;  %1223 = vmatprep.subr.bf16.mxu1 %v1607_v0 }
  0xb2   : > { %1177 = vmatpush3.bf16.msra.mxu0 %v1176_v16  ;;  %1225 = vmatpush3.bf16.msra.mxu1 %v1176_v16 }
  0xb3   : > { %1178 = vmatprep.subr.bf16.mxu0 %v1607_v0  ;;  %1226 = vmatprep.subr.bf16.mxu1 %v1607_v0 }
  0xb6   : > { %1180 = vmatpush3.bf16.msra.mxu0 %v1179_v19  ;;  %1228 = vmatpush3.bf16.msra.mxu1 %v1179_v19 }
  0xb7   : > { %1181 = vmatprep.subr.bf16.mxu0 %v1607_v0  ;;  %1229 = vmatprep.subr.bf16.mxu1 %v1607_v0 }
  0xba   : > { %1183 = vmatpush3.bf16.msra.mxu0 %v1182_v22  ;;  %1231 = vmatpush3.bf16.msra.mxu1 %v1182_v22 }
  0xbb   : > { %1184 = vmatprep.subr.bf16.mxu0 %v1607_v0  ;;  %1232 = vmatprep.subr.bf16.mxu1 %v1607_v0 }
  0xbe   : > { %1186 = vmatpush3.bf16.msra.mxu0 %v1185_v25  ;;  %1234 = vmatpush3.bf16.msra.mxu1 %v1185_v25 }
  0xbf   : > { %1187 = vmatprep.subr.bf16.mxu0 %v1607_v0  ;;  %1235 = vmatprep.subr.bf16.mxu1 %v1607_v0 }
  0xc1   : > { %1056 = vmatmul.mubr.f32.vlgmr.msra.gmra.mrb[0].mxu0 %v425_v30  ;;  %1126 = vmatmul.mubr.f32.vlgmr.msra.gmra.mrb[0].mxu1 %v569_v31 }
  0xc2   : > { %1189 = vmatpush3.bf16.msra.mxu0 %v1188_v32  ;;  %1237 = vmatpush3.bf16.msra.mxu1 %v1188_v32 }
  0xc3   : > { %1190 = vmatprep.subr.bf16.mxu0 %v1607_v0  ;;  %1238 = vmatprep.subr.bf16.mxu1 %v1607_v0 }
  0xc4   : > { %1090 = vmatprep.mubr.msk.f32.mxu0 %vm1608_vm0, %v1609_v1  ;;  %1160 = vmatprep.mubr.msk.f32.mxu1 %vm1608_vm0, %v1609_v1 }
  0xc6   : > { %1192 = vmatpush3.bf16.msra.mxu0 %v1191_v35  ;;  %1240 = vmatpush3.bf16.msra.mxu1 %v1191_v35 }
  0xc7   : > { %1193 = vmatprep.subr.bf16.mxu0 %v1607_v0  ;;  %1241 = vmatprep.subr.bf16.mxu1 %v1607_v0 }
  0xca   : > { %1195 = vmatpush3.bf16.msra.mxu0 %v1194_v38  ;;  %1243 = vmatpush3.bf16.msra.mxu1 %v1194_v38 }
  0xcb   : > { %1196 = vmatprep.subr.bf16.mxu0 %v1607_v0  ;;  %1244 = vmatprep.subr.bf16.mxu1 %v1607_v0 }
  0xce   : > { %1198 = vmatpush3.bf16.msra.mxu0 %v1197_v41  ;;  %1246 = vmatpush3.bf16.msra.mxu1 %v1197_v41 }
  0xcf   : > { %1199 = vmatprep.subr.bf16.mxu0 %v1607_v0  ;;  %1247 = vmatprep.subr.bf16.mxu1 %v1607_v0 }
  0xd2   : > { %1201 = vmatpush3.bf16.msra.mxu0 %v1200_v44  ;;  %1249 = vmatpush3.bf16.msra.mxu1 %v1200_v44 }
  0xd3   : > { %1202 = vmatprep.subr.bf16.mxu0 %v1607_v0  ;;  %1250 = vmatprep.subr.bf16.mxu1 %v1607_v0 }
  0xd6   : > { %1204 = vmatpush3.bf16.msra.mxu0 %v1203_v47  ;;  %1252 = vmatpush3.bf16.msra.mxu1 %v1203_v47 }
  0xd7   : > { %1205 = vmatprep.subr.bf16.mxu0 %v1607_v0  ;;  %1253 = vmatprep.subr.bf16.mxu1 %v1607_v0 }
  0xda   : > { %1207 = vmatpush3.bf16.msra.mxu0 %v1206_v50  ;;  %1255 = vmatpush3.bf16.msra.mxu1 %v1206_v50 }
  0xdb   : > { %1208 = vmatprep.subr.bf16.mxu0 %v1607_v0  ;;  %1256 = vmatprep.subr.bf16.mxu1 %v1607_v0 }
  0xde   : > { %1210 = vmatpush3.bf16.msra.mxu0 %v1209_v53  ;;  %1258 = vmatpush3.bf16.msra.mxu1 %v1209_v53 }
  0xe1   : > { %1091 = vmatmul.mubr.f32.vlgmr.msra.gmra.mrb[0].mxu0 %v1924_v26  ;;  %1161 = vmatmul.mubr.f32.vlgmr.msra.gmra.mrb[0].mxu1 %v1926_v27 }
 0x1b4   : > { %v562_v54 = vpop.f32.mrb[0].mxu0  ;;  %v706_v55 = vpop.f32.mrb[0].mxu1 }
 0x1b5   : > { %716 = vst [vmem:[%s374_s0] sm:$0xff] %v562_v54  ;;  %718 = vst [vmem:[%s381_s7] sm:$0xff] %v706_v55  ;;  %v1092_v56 = vpop.f32.mrb[1].mxu0  ;;  %v1162_v57 = vpop.f32.mrb[1].mxu1 }
 0x1b6   : > { %1490 = shalt.err (!%p1487_p7)
}
 0x1b7   : > { %s1491_s25 = scalar_lea.hbm %s1979_s20, 128  ;;  %s1495_s14 = scalar_lea.hbm %s2057_s4, 256 }
 0x1b8   : > { %p1492_p9 = scmp.ne.s32.totalorder %s1979_s20, %s1491_s25  ;;  %p1496_p2 = scmp.lt.u32.totalorder %s1979_s20, %s2057_s4 }
 0x1b9   : > { %p1497_p6 = scmp.lt.u32.totalorder %s1495_s14, %s1491_s25  ;;  %p1499_p5 = scmp.lt.u32.totalorder %s1491_s25, %s1979_s20 }
 0x1ba   : > { %p1493_p8 = pnand %p1492_p9, %p2110_p11 }
 0x1bb   : > { %p1498_p1 = por %p1497_p6, %p1496_p2 }
 0x1bc   : > { %p1494_p13 = pneg %p1493_p8 }
 0x1bd   : > { %p1500_p4 = por %p1499_p5, %p1498_p1 }
 0x1bf   : > { %p1501_p10 = pnand %p1500_p4, %p1494_p13 }
 0x1c1   : > { %1504 = shalt.err (!%p1501_p10)
}
 0x1c2   : > { %1275 = dma.vmem_to_hbm [thread:$0]  (%p2110_p11), %s1972_s15, 128, %s1979_s20, %s720_s21  }
 0x1c3   : > { %s725_s28 = scalar_lea.sflag [#allocation13], %s1879_s2  ;;  %s1505_s0 = scalar_lea.vmem %s1974_s12, 128 }
 0x1c4   : > { %p1506_p0 = scmp.ne.s32.totalorder %s1974_s12, %s1505_s0  ;;  %s1611_s7 = smov [#allocation12]  }
 0x1c5   : > { %s1509_s17 = sshll.u32 %s1611_s7, 4  ;;  %s1510_s17 = int_to_ptr.vmem [resolvable:$false] %s1509_s17 }
 0x1c6   : > { %p1507_p12 = pnand %p1506_p0, %p2110_p11  ;;  %s1511_s5 = scalar_lea.vmem %s1510_s17, 256 }
 0x1c7   : > { %p1512_p7 = scmp.lt.s32.totalorder %s1974_s12, %s1510_s17  ;;  %p1513_p9 = scmp.lt.s32.totalorder %s1511_s5, %s1505_s0 }
 0x1c8   : > { %p1508_p3 = pneg %p1507_p12 }
 0x1c9   : > { %p1514_p8 = por %p1513_p9, %p1512_p7 }
 0x1cb   : > { %p1515_p13 = pnand %p1514_p8, %p1508_p3 }
 0x1cd   : > { %1518 = shalt.err (!%p1515_p13)
}
 0x1ce   : > { %s1519_s2 = scalar_lea.hbm %s1984_s11, 128  ;;  %s1523_s20 = scalar_lea.hbm %s2109_s10, 256 }
 0x1cf   : > { %p1520_p2 = scmp.ne.s32.totalorder %s1984_s11, %s1519_s2  ;;  %p1524_p5 = scmp.lt.u32.totalorder %s1984_s11, %s2109_s10 }
 0x1d0   : > { %p1525_p4 = scmp.lt.u32.totalorder %s1523_s20, %s1519_s2  ;;  %p1527_p0 = scmp.lt.u32.totalorder %s1519_s2, %s1984_s11 }
 0x1d1   : > { %p1521_p6 = pnand %p1520_p2, %p2110_p11 }
 0x1d2   : > { %p1526_p10 = por %p1525_p4, %p1524_p5 }
 0x1d3   : > { %p1522_p1 = pneg %p1521_p6 }
 0x1d4   : > { %p1528_p12 = por %p1527_p0, %p1526_p10 }
 0x1d6   : > { %p1529_p3 = pnand %p1528_p12, %p1522_p1 }
 0x1d8   : > { %1532 = shalt.err (!%p1529_p3)
}
 0x1d9   : > { %1276 = dma.vmem_to_hbm [thread:$0]  (%p2110_p11), %s1974_s12, 128, %s1984_s11, %s725_s28  }
 0x1da PF: > { %s2111_s21 = sld [smem:[#allocation19_spill]]  ;;  %s2112_s8 = sld [smem:[#allocation22_spill]] }
 0x1db   : > { %s2113_s26 = sld [smem:[#allocation21_spill]] }
 0x1e0   : > { %s767_s13 = sand.u32 1, %s2111_s21   ;;  %p2114_p7 = scmp.ne.s32.totalorder %s2112_s8, 0 }
 0x1e1   : > { %p2115_p9 = scmp.ge.s32.totalorder %s2113_s26, 2  ;;  %s768_s27 = scalar_lea.sflag [#allocation6], %s767_s13 }
 0x1e3   : > { %p1294_p8 = pnand %p2115_p9, %p2114_p7 }
 0x1e5   : > { %1570 = dma.done.wait (!%p1294_p8), %s768_s27, 128  }
 0x1e6   : > { %1572 = vsyncadd (!%p1294_p8), %s768_s27, 4294967168  ;;  %s777_s25 = scalar_lea.sflag [#allocation13], %s767_s13 }
 0x1e7   : > { %1574 = dma.done.wait (!%p1294_p8), %s777_s25, 128  }
 0x1e8   : > { %1576 = vsyncadd (!%p1294_p8), %s777_s25, 4294967168  ;;  %s24_s23 = sadd.s32 1, %s2113_s26   ;;  %s2116_s29 = sld [smem:[#allocation20_spill]] }
 0x1e9   : > { %p21_p13 = scmp.ge.s32.totalorder %s24_s23, 4   ;;  %s2117_s20 = sld [smem:[#allocation24_spill]] }
 0x1ea   : > { %s2118_s12 = sld [smem:[#allocation23_spill]]  ;;  %s2119_s18 = smov %s1583_s19 }
 0x1eb   : > { %s2121_s21 = smov %s1595_s22  ;;  %23 = sbr.rel (!%p21_p13) target bundleno = 12 (0xc), region = 126 }
 0x1ee   : > { %s2120_s19 = smov %s2116_s29 }
 0x1f0   : > { %s2122_s22 = smov %s2118_s12 }
 0x1f2   :  { %782 = vsyncpa [#allocation5], 1 }
 0x1f3   :  { %784 = vsyncpa [#allocation5 + $0x1], 1 }
 0x1f4   :  { %785 = vsyncpa [#allocation8], 1 }
 0x1f5   :  { %786 = vsyncpa [#allocation6], 1 }
 0x1f6   :  { %788 = vsyncpa [#allocation6 + $0x1], 1 }
 0x1f7   :  { %789 = vsyncpa [#allocation13], 1 }
 0x1f8   :  { %791 = vsyncpa [#allocation13 + $0x1], 1 }

</bundles_post_ra>
